<compile_context>
chip_gen: v5e
topology: v5e:2x2
jax: 0.10.0
libtpu: 0.0.40
codegen_flags: <defaults>
</compile_context>

<pallas_src>
import jax
import jax.numpy as jnp
from jax.experimental import pallas as pl
from jax.experimental.pallas import tpu as pltpu


def _round_up(n, m):
    return ((n + m - 1) // m) * m


def _mlp_kernel(xt_ref, w1_ref, b1_ref, w2_ref, b2_ref, w3_ref, b3_ref, ot_ref):
    """Whole MLP fused per batch tile. xt_ref: (8, TB) bf16; ot_ref: (32, TB) f32."""
    xt = xt_ref[...]                                                   # (8, TB) bf16
    # Layer 1: (16,8) @ (8,TB) -> (16,TB), f32 accumulate, + bias, ReLU
    h1 = jnp.dot(w1_ref[...], xt, preferred_element_type=jnp.float32) + b1_ref[...]
    h1 = jnp.maximum(h1, 0.0).astype(jnp.bfloat16)                     # (16, TB)
    # Layer 2: (32,16) @ (16,TB) -> (32,TB)
    h2 = jnp.dot(w2_ref[...], h1, preferred_element_type=jnp.float32) + b2_ref[...]
    h2 = jnp.maximum(h2, 0.0).astype(jnp.bfloat16)                     # (32, TB)
    # Layer 3: (32,32) @ (32,TB) -> (32,TB)  (rows 30,31 are zero-padded)
    ot_ref[...] = (
        jnp.dot(w3_ref[...], h2, preferred_element_type=jnp.float32) + b3_ref[...]
    )


def abalone_mlp_forward(x, params, block_batch=8192, feature_major_out=False):
    """x: (B, 8) float32; params: PyTorch-layout weights w{k}: (out,in), b{k}: (out,).

    Returns (B, 30) float32 (or (30, B) when feature_major_out=True).
    """
    B = x.shape[0]
    # Pad batch only to a multiple of 128 lanes.
    B128 = _round_up(max(B, 1), 128)

    # Batch tile: 128-multiple, capped at block_batch and at the padded batch.
    TB = max(128, (min(block_batch, B128) // 128) * 128)
    # Keep >=2 grid steps when the batch allows it (v7x: two TensorCores).
    if B128 >= 2 * 128 and pl.cdiv(B128, TB) < 2:
        TB = max(128, _round_up(pl.cdiv(B128, 2), 128))
    n_tiles = pl.cdiv(B128, TB)   # last tile may be ragged; Pallas masks it

    # Feature-major, zero-padded, bf16 input slab: (8, B128).
    xt = jnp.pad(x.T.astype(jnp.bfloat16), ((0, 0), (0, B128 - B)))

    w1 = params["w1"].astype(jnp.bfloat16)                          # (16, 8)
    w2 = params["w2"].astype(jnp.bfloat16)                          # (32, 16)
    w3 = jnp.pad(params["w3"].astype(jnp.bfloat16), ((0, 2), (0, 0)))  # (32, 32)
    b1 = params["b1"].astype(jnp.float32).reshape(-1, 1)            # (16, 1)
    b2 = params["b2"].astype(jnp.float32).reshape(-1, 1)            # (32, 1)
    b3 = jnp.pad(params["b3"].astype(jnp.float32), (0, 2)).reshape(-1, 1)  # (32, 1)

    # Scoped-VMEM estimate: double-buffered x + out tiles plus resident weights.
    weight_bytes = (w1.size + w2.size + w3.size) * 2 + (b1.size + b2.size + b3.size) * 4
    vmem_est = 2 * (8 * TB * 2 + 32 * TB * 4) + 2 * weight_bytes
    compiler_kwargs = dict(dimension_semantics=("parallel",))
    if vmem_est > 12 * 1024 * 1024:   # only needed past v5e's 16 MiB scoped default
        compiler_kwargs["vmem_limit_bytes"] = min(
            int(vmem_est * 3 // 2) + (1 << 20), 60 * 1024 * 1024)

    cost = pl.CostEstimate(
        flops=2 * B128 * (16 * 8 + 32 * 16 + 32 * 32),
        transcendentals=0,
        bytes_accessed=int(8 * B128 * 2 + 32 * B128 * 4 + weight_bytes),
    )

    out_t = pl.pallas_call(
        _mlp_kernel,
        out_shape=jax.ShapeDtypeStruct((32, B128), jnp.float32),
        grid=(n_tiles,),
        in_specs=[
            # x tile walks along the batch (lane) axis.
            pl.BlockSpec((8, TB), lambda i: (0, i)),
            # Weights / biases: constant block index -> fetched once, VMEM-resident.
            pl.BlockSpec(w1.shape, lambda i: (0, 0)),
            pl.BlockSpec(b1.shape, lambda i: (0, 0)),
            pl.BlockSpec(w2.shape, lambda i: (0, 0)),
            pl.BlockSpec(b2.shape, lambda i: (0, 0)),
            pl.BlockSpec(w3.shape, lambda i: (0, 0)),
            pl.BlockSpec(b3.shape, lambda i: (0, 0)),
        ],
        out_specs=pl.BlockSpec((32, TB), lambda i: (0, i)),
        compiler_params=pltpu.CompilerParams(**compiler_kwargs),
        cost_estimate=cost,
    )(xt, w1, b1, w2, b2, w3, b3)

    if feature_major_out:
        # Lane-dense (30, B) slab; consumer should reduce over axis 0.
        return out_t[:30, :B]
    # Module semantics: (B, 30).  This transpose is an extra HBM pass; use
    # feature_major_out=True when the downstream op can consume (30, B).
    return out_t[:30, :B].T


def init_params(key):
    """Deterministic init mimicking PyTorch nn.Linear defaults:
    U(-1/sqrt(fan_in), 1/sqrt(fan_in)); weights stored PyTorch-style (out, in)."""
    layer_dims = [(8, 16), (16, 32), (32, 30)]
    params = {}
    for i, (fan_in, fan_out) in enumerate(layer_dims, start=1):
        key, kw, kb = jax.random.split(key, 3)
        bound = 1.0 / (fan_in ** 0.5)
        params[f"w{i}"] = jax.random.uniform(
            kw, (fan_out, fan_in), jnp.float32, minval=-bound, maxval=bound)
        params[f"b{i}"] = jax.random.uniform(
            kb, (fan_out,), jnp.float32, minval=-bound, maxval=bound)
    return params


def reference_forward(x, params, use_bf16=False):
    """Pure-JAX reference. use_bf16=True mirrors the kernel's mixed precision."""
    def cast(a):
        return a.astype(jnp.bfloat16) if use_bf16 else a
    h = cast(x)
    for k in (1, 2, 3):
        w = cast(params[f"w{k}"])
        b = params[f"b{k}"].astype(jnp.float32)
        h = jnp.dot(h, w.T, preferred_element_type=jnp.float32) + b
        if k < 3:
            h = jnp.maximum(h, 0.0)
            h = cast(h)
    return h


if __name__ == "__main__":
    key = jax.random.PRNGKey(0)
    key, kx = jax.random.split(key)
    batch = 8
    x = jax.random.normal(kx, (batch, 8), dtype=jnp.float32)

    params = init_params(key)

    out = abalone_mlp_forward(x, params)
    out = jax.block_until_ready(out)

    assert out.shape == (batch, 30), out.shape
    # Tight check against a bf16-matched reference (same mixed precision).
    ref_bf16 = reference_forward(x, params, use_bf16=True)
    assert jnp.allclose(out, ref_bf16, atol=1e-2, rtol=1e-2), "mismatch vs bf16 reference"
    # Loose check against the full-f32 PyTorch-semantics reference.
    ref_f32 = reference_forward(x, params, use_bf16=False)
    assert jnp.allclose(out, ref_f32, atol=1e-1, rtol=1e-1), "mismatch vs f32 reference"

    # Feature-major fast path (skips the wrapper transpose) must agree too.
    out_fm = jax.block_until_ready(
        abalone_mlp_forward(x, params, feature_major_out=True))
    assert out_fm.shape == (30, batch), out_fm.shape
    assert jnp.allclose(out_fm.T, out, atol=1e-6, rtol=1e-6), "feature-major mismatch"

    print("KERNEL_OK")
</pallas_src>

<mosaic_0001>
module attributes {stable_mosaic.version = 11 : i64} {
  func.func @_mlp_kernel(%arg0: i32, %arg1: memref<8x128xbf16, #tpu.memory_space<vmem>>, %arg2: memref<16x8xbf16, #tpu.memory_space<vmem>>, %arg3: memref<16x1xf32, #tpu.memory_space<vmem>>, %arg4: memref<32x16xbf16, #tpu.memory_space<vmem>>, %arg5: memref<32x1xf32, #tpu.memory_space<vmem>>, %arg6: memref<32x32xbf16, #tpu.memory_space<vmem>>, %arg7: memref<32x1xf32, #tpu.memory_space<vmem>>, %arg8: memref<32x128xf32, #tpu.memory_space<vmem>>) attributes {dimension_semantics = [#tpu.dimension_semantics<parallel>], iteration_bounds = array<i64: 1>, scalar_prefetch = 0 : i64, scratch_operands = 0 : i64, tpu.core_type = #tpu.core_type<tc>, window_params = [{transform_indices = @transform_0, window_bounds = array<i64: 8, 128>}, {pipeline_mode = #tpu.pipeline_mode<synchronous>, transform_indices = @transform_1, window_bounds = array<i64: 16, 8>}, {pipeline_mode = #tpu.pipeline_mode<synchronous>, transform_indices = @transform_2, window_bounds = array<i64: 16, 1>}, {pipeline_mode = #tpu.pipeline_mode<synchronous>, transform_indices = @transform_3, window_bounds = array<i64: 32, 16>}, {pipeline_mode = #tpu.pipeline_mode<synchronous>, transform_indices = @transform_4, window_bounds = array<i64: 32, 1>}, {pipeline_mode = #tpu.pipeline_mode<synchronous>, transform_indices = @transform_5, window_bounds = array<i64: 32, 32>}, {pipeline_mode = #tpu.pipeline_mode<synchronous>, transform_indices = @transform_6, window_bounds = array<i64: 32, 1>}, {transform_indices = @transform_7, window_bounds = array<i64: 32, 128>}]} {
    %c0 = arith.constant 0 : index
    %c0_0 = arith.constant 0 : index
    %0 = vector.load %arg1[%c0, %c0_0] : memref<8x128xbf16, #tpu.memory_space<vmem>>, vector<8x128xbf16>
    %c0_1 = arith.constant 0 : index
    %c0_2 = arith.constant 0 : index
    %1 = vector.load %arg2[%c0_1, %c0_2] : memref<16x8xbf16, #tpu.memory_space<vmem>>, vector<16x8xbf16>
    %cst = arith.constant dense<0.000000e+00> : vector<16x128xf32>
    %2 = tpu.matmul %1, %0, %cst {dimension_numbers = #tpu.dot_dimension_numbers<[1], [0], [0], [1], [0, 0, 1, 1], [], []>} : vector<16x8xbf16>, vector<8x128xbf16>, vector<16x128xf32> -> vector<16x128xf32>
    %c0_3 = arith.constant 0 : index
    %c0_4 = arith.constant 0 : index
    %3 = vector.load %arg3[%c0_3, %c0_4] : memref<16x1xf32, #tpu.memory_space<vmem>>, vector<16x1xf32>
    %4 = vector.broadcast %3 : vector<16x1xf32> to vector<16x128xf32>
    %5 = arith.addf %2, %4 : vector<16x128xf32>
    %cst_5 = arith.constant 0.000000e+00 : f32
    %6 = vector.broadcast %cst_5 : f32 to vector<16x128xf32>
    %7 = arith.maximumf %5, %6 : vector<16x128xf32>
    %8 = arith.truncf %7 : vector<16x128xf32> to vector<16x128xbf16>
    %c0_6 = arith.constant 0 : index
    %c0_7 = arith.constant 0 : index
    %9 = vector.load %arg4[%c0_6, %c0_7] : memref<32x16xbf16, #tpu.memory_space<vmem>>, vector<32x16xbf16>
    %cst_8 = arith.constant dense<0.000000e+00> : vector<32x128xf32>
    %10 = tpu.matmul %9, %8, %cst_8 {dimension_numbers = #tpu.dot_dimension_numbers<[1], [0], [0], [1], [0, 0, 1, 1], [], []>} : vector<32x16xbf16>, vector<16x128xbf16>, vector<32x128xf32> -> vector<32x128xf32>
    %c0_9 = arith.constant 0 : index
    %c0_10 = arith.constant 0 : index
    %11 = vector.load %arg5[%c0_9, %c0_10] : memref<32x1xf32, #tpu.memory_space<vmem>>, vector<32x1xf32>
    %12 = vector.broadcast %11 : vector<32x1xf32> to vector<32x128xf32>
    %13 = arith.addf %10, %12 : vector<32x128xf32>
    %cst_11 = arith.constant 0.000000e+00 : f32
    %14 = vector.broadcast %cst_11 : f32 to vector<32x128xf32>
    %15 = arith.maximumf %13, %14 : vector<32x128xf32>
    %16 = arith.truncf %15 : vector<32x128xf32> to vector<32x128xbf16>
    %c0_12 = arith.constant 0 : index
    %c0_13 = arith.constant 0 : index
    %17 = vector.load %arg6[%c0_12, %c0_13] : memref<32x32xbf16, #tpu.memory_space<vmem>>, vector<32x32xbf16>
    %cst_14 = arith.constant dense<0.000000e+00> : vector<32x128xf32>
    %18 = tpu.matmul %17, %16, %cst_14 {dimension_numbers = #tpu.dot_dimension_numbers<[1], [0], [0], [1], [0, 0, 1, 1], [], []>} : vector<32x32xbf16>, vector<32x128xbf16>, vector<32x128xf32> -> vector<32x128xf32>
    %c0_15 = arith.constant 0 : index
    %c0_16 = arith.constant 0 : index
    %19 = vector.load %arg7[%c0_15, %c0_16] : memref<32x1xf32, #tpu.memory_space<vmem>>, vector<32x1xf32>
    %20 = vector.broadcast %19 : vector<32x1xf32> to vector<32x128xf32>
    %21 = arith.addf %18, %20 : vector<32x128xf32>
    %c0_17 = arith.constant 0 : index
    %c0_18 = arith.constant 0 : index
    %22 = vector.load %arg8[%c0_17, %c0_18] : memref<32x128xf32, #tpu.memory_space<vmem>>, vector<32x128xf32>
    tpu.vector_store %arg8[%c0_17, %c0_18], %21 {strides = array<i32>} : memref<32x128xf32, #tpu.memory_space<vmem>>, vector<32x128xf32>,
    return
  }
  func.func @transform_0(%arg0: i32) -> (i32, i32) {
    %c0_i32 = arith.constant 0 : i32
    %c0_i32_0 = arith.constant 0 : i32
    return %c0_i32, %arg0 : i32, i32
  }
  func.func @transform_1(%arg0: i32) -> (i32, i32) {
    %c0_i32 = arith.constant 0 : i32
    %c0_i32_0 = arith.constant 0 : i32
    %c0_i32_1 = arith.constant 0 : i32
    return %c0_i32, %c0_i32_0 : i32, i32
  }
  func.func @transform_2(%arg0: i32) -> (i32, i32) {
    %c0_i32 = arith.constant 0 : i32
    %c0_i32_0 = arith.constant 0 : i32
    %c0_i32_1 = arith.constant 0 : i32
    return %c0_i32, %c0_i32_0 : i32, i32
  }
  func.func @transform_3(%arg0: i32) -> (i32, i32) {
    %c0_i32 = arith.constant 0 : i32
    %c0_i32_0 = arith.constant 0 : i32
    %c0_i32_1 = arith.constant 0 : i32
    return %c0_i32, %c0_i32_0 : i32, i32
  }
  func.func @transform_4(%arg0: i32) -> (i32, i32) {
    %c0_i32 = arith.constant 0 : i32
    %c0_i32_0 = arith.constant 0 : i32
    %c0_i32_1 = arith.constant 0 : i32
    return %c0_i32, %c0_i32_0 : i32, i32
  }
  func.func @transform_5(%arg0: i32) -> (i32, i32) {
    %c0_i32 = arith.constant 0 : i32
    %c0_i32_0 = arith.constant 0 : i32
    %c0_i32_1 = arith.constant 0 : i32
    return %c0_i32, %c0_i32_0 : i32, i32
  }
  func.func @transform_6(%arg0: i32) -> (i32, i32) {
    %c0_i32 = arith.constant 0 : i32
    %c0_i32_0 = arith.constant 0 : i32
    %c0_i32_1 = arith.constant 0 : i32
    return %c0_i32, %c0_i32_0 : i32, i32
  }
  func.func @transform_7(%arg0: i32) -> (i32, i32) {
    %c0_i32 = arith.constant 0 : i32
    %c0_i32_0 = arith.constant 0 : i32
    return %c0_i32, %arg0 : i32, i32
  }
}

</mosaic_0001>

<bundles_post_ra>
// kernel: tpu_custom_call.1
= control target key start
LH: loop header
LB: loop body
LE: loop exit
PB: predicated region body
PF: predicated region fallthrough
CT: control target
= control target key end

     0   :  { %vm52_vm0 = vcmask 1043456   ;;  %v294_v2 = vmov 0   ;;  %vm48_vm1 = vcmask 64512   ;;  %s389_s0 = inlined_call_operand.vmem [shape: bf16[8,128], index: 0, kind: input, shape index: {}]   ;;  %s390_s1 = inlined_call_operand.vmem [shape: bf16[16,8], index: 1, kind: input, shape index: {}]   ;;  %s391_s2 = inlined_call_operand.vmem [shape: f32[16,1], index: 2, kind: input, shape index: {}]   ;;  %s392_s3 = inlined_call_operand.vmem [shape: bf16[32,16], index: 3, kind: input, shape index: {}]   ;;  %s393_s4 = inlined_call_operand.vmem [shape: f32[32,1], index: 4, kind: input, shape index: {}]   ;;  %s394_s5 = inlined_call_operand.vmem [shape: bf16[32,32], index: 5, kind: input, shape index: {}]   ;;  %s395_s6 = inlined_call_operand.vmem [shape: f32[32,1], index: 6, kind: input, shape index: {}]   ;;  %s396_s7 = inlined_call_operand.hbm [shape: f32[32,128], index: 7, kind: output, shape index: {}]  }
   0x1   :  { %v31_v0 = vld [vmem:[%s391_s2] sm:$0xff]  ;;  %265 = vset.pattern.permute.xlu0 %v294_v2  ;;  %266 = vset.pattern.permute.xlu1 %v294_v2 }
   0x2   :  { %v28_v1 = vld [vmem:[%s389_s0] sm:$0xf]  ;;  %35 = vperm.xlu0 %265, %v31_v0  }
   0x3   :  { %v54_v3 = vsel %vm52_vm0, %v28_v1, 0  ;;  %v254_v4 = vld [vmem:[%s390_s1] sm:$0xff] }
   0x4   :  { %63 = vmatpush.bf16.msra.mxu0 %v54_v3 }
   0x5   :  { %12 = vsyncpa [#allocation3], 0  ;;  %267 = vset.pattern.permute.xlu2 %v294_v2  ;;  %v32_v5 = vld [vmem:[%s391_s2 + $0x8] sm:$0xff]  ;;  %v147_v6 = vld [vmem:[%s395_s6] sm:$0xff]  ;;  %vm111_vm2 = vcmask 130048   ;;  %vm181_vm3 = vcmask 261120  }
   0x6   :  { %v150_v7 = vld [vmem:[%s395_s6 + $0x18] sm:$0xff]  ;;  %v79_v8 = vld [vmem:[%s393_s4 + $0x10] sm:$0xff]  ;;  %v77_v12 = vld [vmem:[%s393_s4] sm:$0xff]  ;;  %s295_s27 = smov [#allocation2]   ;;  %s217_s8 = sshll.u32 %s396_s7, 4  ;;  %s218_s8 = int_to_ptr.hbm [resolvable:$true] %s217_s8 }
   0x7   :  { %233 = vmatmul.msk.bf16.vlgmr.msra.gmra.mxu0 %vm48_vm1, %v254_v4  ;;  %93 = vperm.xlu1 %266, %v79_v8   ;;  %v80_v11 = vld [vmem:[%s393_s4 + $0x18] sm:$0xff]  ;;  %v148_v16 = vld [vmem:[%s395_s6 + $0x8] sm:$0xff]  ;;  %v255_v22 = vld [vmem:[%s392_s3] sm:$0xff]  ;;  %s215_s28 = sshll.u32 %s295_s27, 4  ;;  %s297_s0 = smov 8   ;;  %s216_s28 = int_to_ptr.vmem [resolvable:$true] %s215_s28 }
   0x8   :  { %83 = vperm.xlu2 %267, %v77_v12   ;;  %v78_v17 = vld [vmem:[%s393_s4 + $0x8] sm:$0xff]  ;;  %v149_v23 = vld [vmem:[%s395_s6 + $0x10] sm:$0xff]  ;;  %v257_v43 = vld [vmem:[%s394_s5] sm:$0xff] }
   0x9   :  { %v256_v24 = vld [vmem:[%s392_s3 + $0x8] sm:$0xff] }
   0xa   :  { %40 = vperm.xlu0 %265, %v32_v5   ;;  %v258_v44 = vld [vmem:[%s394_s5 + $0x8] sm:$0xff]  ;;  %s296_s5 = smov 128  }
   0xf   :  { %98 = vperm.xlu1 %266, %v80_v11  }
  0x10   :  { %88 = vperm.xlu2 %267, %v78_v17  }
  0x12   :  { %153 = vperm.xlu0 %265, %v147_v6  }
  0x17   :  { %158 = vperm.xlu1 %266, %v148_v16  }
  0x18   :  { %163 = vperm.xlu2 %267, %v149_v23  }
  0x1a   :  { %168 = vperm.xlu0 %265, %v150_v7  }
  0x62   :  { %v84_v27 = vpop.permute.xlu2 %83 }
  0x6a   :  { %v89_v30 = vpop.permute.xlu2 %88 }
  0x72   :  { %v164_v46 = vpop.permute.xlu2 %163 }
  0x74   :  { %v36_v9 = vpop.permute.xlu0 %35 }
  0x79   :  { %v94_v28 = vpop.permute.xlu1 %93 }
  0x7c   :  { %v41_v14 = vpop.permute.xlu0 %40 }
  0x81   :  { %v99_v32 = vpop.permute.xlu1 %98 }
  0x84   :  { %v65_v10 = vpop.f32.mrf.mxu0  ;;  %v154_v45 = vpop.permute.xlu0 %153 }
  0x85   :  { %v66_v13 = vadd.f32 %v65_v10, %v36_v9 }
  0x87   :  { %v70_v19 = vmax.f32 %v66_v13, 0.0 }
  0x89   :  { %v159_v52 = vpop.permute.xlu1 %158 }
  0x8c   :  { %v67_v15 = vpop.f32.mrf.mxu0  ;;  %v169_v51 = vpop.permute.xlu0 %168 }
  0x8d   :  { %v68_v18 = vadd.f32 %v67_v15, %v41_v14 }
  0x8f   :  { %v71_v20 = vmax.f32 %v68_v18, 0.0 }
  0x91   :  { %v72_v21 = vpack.c.bf16 %v71_v20, %v70_v19 }
  0x93   :  { %125 = vmatpush.bf16.msra.mxu1 %v72_v21 }
  0x96   :  { %242 = vmatmul.msk.bf16.vlgmr.msra.gmra.mxu1 %vm111_vm2, %v255_v22 }
  0xa6   :  { %243 = vmatmul.msk.bf16.gmra.mxu1 %vm111_vm2, %v256_v24 }
 0x113   :  { %v127_v25 = vpop.f32.mrf.mxu1 }
 0x114   :  { %v128_v36 = vadd.f32 %v127_v25, %v84_v27 }
 0x116   :  { %v137_v41 = vmax.f32 %v128_v36, 0.0 }
 0x11b   :  { %v129_v26 = vpop.f32.mrf.mxu1 }
 0x11c   :  { %v130_v34 = vadd.f32 %v129_v26, %v89_v30 }
 0x11e   :  { %v138_v39 = vmax.f32 %v130_v34, 0.0 }
 0x120   :  { %v141_v42 = vpack.c.bf16 %v138_v39, %v137_v41 }
 0x123   :  { %v132_v29 = vpop.f32.mrf.mxu1 }
 0x124   :  { %v133_v31 = vadd.f32 %v132_v29, %v94_v28 }
 0x126   :  { %v139_v37 = vmax.f32 %v133_v31, 0.0 }
 0x12b   :  { %v134_v33 = vpop.f32.mrf.mxu1 }
 0x12c   :  { %v135_v35 = vadd.f32 %v134_v33, %v99_v32 }
 0x12e   :  { %v140_v38 = vmax.f32 %v135_v35, 0.0 }
 0x130   :  { %v142_v40 = vpack.c.bf16 %v140_v38, %v139_v37 }
 0x132   :  { %194 = vmatpush.bf16.msra.mxu2 %v142_v40  ;;  %259 = vmatpush.bf16.msra.mxu3 %v142_v40 }
 0x136   :  { %195 = vmatpush.bf16.msra.mxu2 %v141_v42  ;;  %260 = vmatpush.bf16.msra.mxu3 %v141_v42 }
 0x139   :  { %252 = vmatmul.msk.bf16.vlgmr.msra.gmra.mxu2 %vm181_vm3, %v257_v43  ;;  %253 = vmatmul.msk.bf16.vlgmr.msra.gmra.mxu3 %vm181_vm3, %v258_v44 }
 0x1bc   :  { %v197_v47 = vpop.f32.mrf.mxu2  ;;  %v202_v48 = vpop.f32.mrf.mxu3 }
 0x1bd   :  { %v198_v49 = vadd.f32 %v197_v47, %v154_v45  ;;  %v203_v50 = vadd.f32 %v202_v48, %v164_v46 }
 0x1bf   :  { %207 = vst [vmem:[#allocation2] sm:$0xff] %v198_v49 }
 0x1c0   :  { %209 = vst [vmem:[#allocation2 + $0x10] sm:$0xff] %v203_v50 }
 0x1c4   :  { %v199_v53 = vpop.f32.mrf.mxu2  ;;  %v204_v54 = vpop.f32.mrf.mxu3 }
 0x1c5   :  { %v200_v55 = vadd.f32 %v199_v53, %v159_v52  ;;  %v205_v56 = vadd.f32 %v204_v54, %v169_v51 }
 0x1c7   :  { %208 = vst [vmem:[#allocation2 + $0x8] sm:$0xff] %v200_v55 }
 0x1c8   :  { %210 = vst [vmem:[#allocation2 + $0x18] sm:$0xff] %v205_v56 }
 0x1c9   :  { %223 = dma.vmem_to_hbm [thread:$0]  %s216_s28, 512, %s218_s8, [#allocation3], %s296_s5, %s296_s5, %s297_s0  }
 0x1ca   :  { %292 = dma.done.wait [#allocation3], 512  }
 0x1cb   :  { %293 = vsyncadd [#allocation3], 4294966784 }
 0x1cc   :  { %228 = vsyncpa [#allocation3], 1 }

</bundles_post_ra>
